<compile_context>
chip_gen: v6e
topology: v6e:2x2x1
jax: 0.10.0
libtpu: 0.0.40
codegen_flags: <defaults>
</compile_context>

<pallas_src>
import functools

import jax
import jax.numpy as jnp
from jax.experimental import pallas as pl
from jax.experimental.pallas import tpu as pltpu

_LANE = 128
_SUBLANE = 8


def _round_up(x, m):
    return ((x + m - 1) // m) * m


def _round_down(x, m):
    return (x // m) * m


def _classifier_logit_kernel(x_ref, w_ref, b_ref, out_ref, acc_ref, *,
                             d_total, need_mask):
    # x_ref: (tm, tk) VMEM   w_ref: (1, tk) VMEM   b_ref: (1, 1) SMEM
    # out_ref: (tm, 2) VMEM  acc_ref: (tm, 1) f32 VMEM scratch
    k = pl.program_id(1)

    @pl.when(k == 0)
    def _():
        acc_ref[...] = jnp.zeros_like(acc_ref)

    x = x_ref[...]                      # (tm, tk) f32
    w = w_ref[...]                      # (1, tk)  f32 (broadcast over rows)
    prod = x * w                        # VPU elementwise, not an N=1 MXU matvec
    if need_mask:
        tm, tk = x.shape
        col = jax.lax.broadcasted_iota(jnp.int32, (tm, tk), 1) + k * tk
        prod = jnp.where(col < d_total, prod, 0.0)   # ragged K tail
    # Exact-f32 lane reduce on the XLU.
    acc_ref[...] += jnp.sum(prod, axis=-1, keepdims=True)

    @pl.when(k == pl.num_programs(1) - 1)
    def _():
        logits = acc_ref[...] + b_ref[0, 0]          # (tm, 1)
        y = jax.nn.sigmoid(logits)                   # model.pred(x)
        rest = 1.0 - y
        # One store for the whole (tm, 2) tile (no masked width-1 column stores).
        out_ref[...] = jnp.concatenate([rest, y], axis=1).astype(out_ref.dtype)


def classifier_logit_wrapper(x_nchw, weight, bias, *, max_block_m=2048,
                             tile_bytes=8 * 1024 * 1024):
    """ClassifierLogitWrapper.forward: cat([1 - pred(x), pred(x)], dim=1).

    x_nchw: (B, C, H, W) float32; weight: (C*H*W, 1); bias: (1,).
    """
    B = x_nchw.shape[0]
    D = weight.shape[0]
    x_flat = x_nchw.reshape(B, D).astype(jnp.float32)   # flatten NCHW row-major
    w = weight.reshape(1, D).astype(jnp.float32)         # lane-major weight
    b2d = bias.reshape(1, 1).astype(jnp.float32)

    bytes_per_elem = 4
    min_rows = 256
    # K tile: full D if >= min_rows batch rows still fit the per-buffer byte
    # budget; otherwise tile D in lane-aligned chunks so tm stays large.
    if D * bytes_per_elem * min_rows <= tile_bytes:
        tk = D
    else:
        tk = max(_LANE, _round_down(tile_bytes // (min_rows * bytes_per_elem), _LANE))
        tk = min(tk, _round_down(D, _LANE))
    num_k = pl.cdiv(D, tk)

    # Batch tile sized by byte budget (~8 MiB per x buffer: 2 buffers + the
    # lane-padded (tm,128) out / acc tiles stay well under 32 MiB scoped VMEM).
    tm = tile_bytes // (tk * bytes_per_elem)
    tm = max(_SUBLANE, _round_down(tm, _SUBLANE))
    tm = min(tm, max_block_m, _round_up(B, _SUBLANE))
    num_m = pl.cdiv(B, tm)                 # ragged tail: OOB rows not written

    kernel = functools.partial(_classifier_logit_kernel,
                               d_total=D, need_mask=(D % tk != 0))

    out = pl.pallas_call(
        kernel,
        out_shape=jax.ShapeDtypeStruct((B, 2), jnp.float32),
        grid=(num_m, num_k),
        in_specs=[
            # x streams through VMEM one (tm, tk) tile per step (auto double-buffered).
            pl.BlockSpec((tm, tk), lambda i, k: (i, k)),
            # weight as a (1, tk) lane-dense slab (no (D,1) lane padding).
            pl.BlockSpec((1, tk), lambda i, k: (0, k)),
            # bias as an SMEM scalar (free sreg read, no padded VMEM tile).
            pl.BlockSpec(memory_space=pltpu.MemorySpace.SMEM),
        ],
        out_specs=pl.BlockSpec((tm, 2), lambda i, k: (i, 0)),
        scratch_shapes=[pltpu.VMEM((tm, 1), jnp.float32)],
        compiler_params=pltpu.CompilerParams(
            dimension_semantics=("parallel", "arbitrary"),
            vmem_limit_bytes=32 * 1024 * 1024,
        ),
    )(x_flat, w, b2d)

    return out


if __name__ == "__main__":
    key = jax.random.PRNGKey(0)
    kx, kw, kb = jax.random.split(key, 3)

    B, C, H, W = 2, 4, 16, 16
    D = C * H * W

    x = jax.random.normal(kx, (B, C, H, W), dtype=jnp.float32)
    weight = jax.random.normal(kw, (D, 1), dtype=jnp.float32) * 0.02
    bias = jax.random.normal(kb, (1,), dtype=jnp.float32) * 0.02

    out = classifier_logit_wrapper(x, weight, bias)
    out = jax.block_until_ready(out)

    # Pure-JAX reference check.
    y_ref = jax.nn.sigmoid(x.reshape(B, D) @ weight + bias.reshape(1, 1))
    ref = jnp.concatenate([1.0 - y_ref, y_ref], axis=1)
    assert out.shape == (B, 2)
    assert jnp.allclose(out, ref, atol=1e-5, rtol=1e-5)

    print("KERNEL_OK")
</pallas_src>

<mosaic_0001>
module attributes {stable_mosaic.version = 11 : i64} {
  func.func @_classifier_logit_kernel(%arg0: i32, %arg1: i32, %arg2: memref<8x1024xf32, #tpu.memory_space<vmem>>, %arg3: memref<1x1024xf32, #tpu.memory_space<vmem>>, %arg4: memref<1x1xf32, #tpu.memory_space<smem>>, %arg5: memref<8x2xf32, #tpu.memory_space<vmem>>, %arg6: memref<8x1xf32, #tpu.memory_space<vmem>>) attributes {dimension_semantics = [#tpu.dimension_semantics<parallel>, #tpu.dimension_semantics<arbitrary>], iteration_bounds = array<i64: 1, 1>, scalar_prefetch = 0 : i64, scratch_operands = 1 : i64, tpu.core_type = #tpu.core_type<tc>, window_params = [{transform_indices = @transform_0, window_bounds = array<i64: 8, 1024>}, {transform_indices = @transform_1, window_bounds = array<i64: 1, 1024>}, {transform_indices = @transform_2, window_bounds = array<i64: 1, 1>}, {transform_indices = @transform_3, window_bounds = array<i64: 8, 2>}]} {
    %c0_i32 = arith.constant 0 : i32
    %0 = arith.cmpi eq, %arg1, %c0_i32 : i32
    %1 = arith.extui %0 : i1 to i32
    %c0_i32_0 = arith.constant 0 : i32
    %2 = arith.cmpi ne, %1, %c0_i32_0 : i32
    scf.if %2 {
      %cst_10 = arith.constant 0.000000e+00 : f32
      %15 = vector.broadcast %cst_10 : f32 to vector<8x1xf32>
      %c0_11 = arith.constant 0 : index
      %c0_12 = arith.constant 0 : index
      %16 = vector.load %arg6[%c0_11, %c0_12] : memref<8x1xf32, #tpu.memory_space<vmem>>, vector<8x1xf32>
      tpu.vector_store %arg6[%c0_11, %c0_12], %15 {strides = array<i32>} : memref<8x1xf32, #tpu.memory_space<vmem>>, vector<8x1xf32>,
    } else {
    }
    %c0 = arith.constant 0 : index
    %c0_1 = arith.constant 0 : index
    %3 = vector.load %arg2[%c0, %c0_1] : memref<8x1024xf32, #tpu.memory_space<vmem>>, vector<8x1024xf32>
    %c0_2 = arith.constant 0 : index
    %c0_3 = arith.constant 0 : index
    %4 = vector.load %arg3[%c0_2, %c0_3] : memref<1x1024xf32, #tpu.memory_space<vmem>>, vector<1x1024xf32>
    %5 = vector.broadcast %4 : vector<1x1024xf32> to vector<8x1024xf32>
    %6 = arith.mulf %3, %5 : vector<8x1024xf32>
    %c0_4 = arith.constant 0 : index
    %c0_5 = arith.constant 0 : index
    %7 = vector.load %arg6[%c0_4, %c0_5] : memref<8x1xf32, #tpu.memory_space<vmem>>, vector<8x1xf32>
    %cst = arith.constant dense<0.000000e+00> : vector<8xf32>
    %8 = vector.multi_reduction <add>, %6, %cst [1] : vector<8x1024xf32> to vector<8xf32>
    %9 = vector.shape_cast %8 : vector<8xf32> to vector<8x1xf32>
    %10 = arith.addf %7, %9 : vector<8x1xf32>
    %c0_6 = arith.constant 0 : index
    %c0_7 = arith.constant 0 : index
    %11 = vector.load %arg6[%c0_6, %c0_7] : memref<8x1xf32, #tpu.memory_space<vmem>>, vector<8x1xf32>
    tpu.vector_store %arg6[%c0_6, %c0_7], %10 {strides = array<i32>} : memref<8x1xf32, #tpu.memory_space<vmem>>, vector<8x1xf32>,
    %c0_i32_8 = arith.constant 0 : i32
    %12 = arith.cmpi eq, %arg1, %c0_i32_8 : i32
    %13 = arith.extui %12 : i1 to i32
    %c0_i32_9 = arith.constant 0 : i32
    %14 = arith.cmpi ne, %13, %c0_i32_9 : i32
    scf.if %14 {
      %c0_10 = arith.constant 0 : index
      %c0_11 = arith.constant 0 : index
      %15 = vector.load %arg6[%c0_10, %c0_11] : memref<8x1xf32, #tpu.memory_space<vmem>>, vector<8x1xf32>
      %c0_12 = arith.constant 0 : index
      %c0_13 = arith.constant 0 : index
      %16 = memref.load %arg4[%c0_12, %c0_13] : memref<1x1xf32, #tpu.memory_space<smem>>
      %17 = vector.broadcast %16 : f32 to vector<8x1xf32>
      %18 = arith.addf %15, %17 : vector<8x1xf32>
      %19 = arith.negf %18 : vector<8x1xf32>
      %20 = math.exp %19 : vector<8x1xf32>
      %cst_14 = arith.constant 1.000000e+00 : f32
      %21 = vector.broadcast %cst_14 : f32 to vector<8x1xf32>
      %22 = arith.addf %21, %20 : vector<8x1xf32>
      %23 = arith.divf %21, %22 : vector<8x1xf32>
      %cst_15 = arith.constant 1.000000e+00 : f32
      %24 = vector.broadcast %cst_15 : f32 to vector<8x1xf32>
      %25 = arith.subf %24, %23 : vector<8x1xf32>
      %26 = tpu.concatenate %25, %23 in 1 : vector<8x1xf32>, vector<8x1xf32> -> vector<8x2xf32>
      %c0_16 = arith.constant 0 : index
      %c0_17 = arith.constant 0 : index
      %27 = vector.load %arg5[%c0_16, %c0_17] : memref<8x2xf32, #tpu.memory_space<vmem>>, vector<8x2xf32>
      tpu.vector_store %arg5[%c0_16, %c0_17], %26 {strides = array<i32>} : memref<8x2xf32, #tpu.memory_space<vmem>>, vector<8x2xf32>,
    } else {
    }
    return
  }
  func.func @transform_0(%arg0: i32, %arg1: i32) -> (i32, i32) {
    %c0_i32 = arith.constant 0 : i32
    return %arg0, %arg1 : i32, i32
  }
  func.func @transform_1(%arg0: i32, %arg1: i32) -> (i32, i32) {
    %c0_i32 = arith.constant 0 : i32
    %c0_i32_0 = arith.constant 0 : i32
    return %c0_i32, %arg1 : i32, i32
  }
  func.func @transform_2(%arg0: i32, %arg1: i32) -> (i32, i32) {
    %c0_i32 = arith.constant 0 : i32
    %c0_i32_0 = arith.constant 0 : i32
    %c0_i32_1 = arith.constant 0 : i32
    return %c0_i32, %c0_i32_0 : i32, i32
  }
  func.func @transform_3(%arg0: i32, %arg1: i32) -> (i32, i32) {
    %c0_i32 = arith.constant 0 : i32
    %c0_i32_0 = arith.constant 0 : i32
    return %arg0, %c0_i32 : i32, i32
  }
}

</mosaic_0001>

<bundles_post_ra>
// kernel: tpu_custom_call.1
= control target key start
LH: loop header
LB: loop body
LE: loop exit
PB: predicated region body
PF: predicated region fallthrough
CT: control target
= control target key end

     0   :  { %9 = vsyncpa [#allocation5], 0  ;;  %s462_s0 = inlined_call_operand.hbm [shape: f32[2,1024], index: 0, kind: input, shape index: {}]   ;;  %s463_s1 = inlined_call_operand.hbm [shape: f32[1,1024], index: 1, kind: input, shape index: {}]   ;;  %s464_s2 = inlined_call_operand.<no memory space> [shape: f32[1,1], index: 2, kind: input, shape index: {}]   ;;  %s465_s3 = inlined_call_operand.hbm [shape: f32[2,2], index: 3, kind: output, shape index: {}]  }
   0x1   :  { %10 = vsyncpa [#allocation8], 0 }
   0x2   :  { %11 = vsyncpa [#allocation6], 0 }
   0x3   :  { %16 = vsyncadd [#allocation5], 768  ;;  %s399_s12 = smov [#allocation4]  }
   0x4   :  { %s17_s13 = sshll.u32 %s399_s12, 4  ;;  %s18_s13 = int_to_ptr.vmem [resolvable:$true] %s17_s13 }
   0x5   :  { %s341_s14 = scalar_lea.vmem %s18_s13, 256  ;;  %s345_s15 = scalar_lea.vmem %s18_s13, 1024 }
   0x6   :  { %p342_p0 = scmp.ne.s32.totalorder %s18_s13, %s341_s14  ;;  %p346_p1 = scmp.lt.s32.totalorder %s18_s13, %s18_s13 }
   0x7   :  { %p347_p2 = scmp.lt.s32.totalorder %s345_s15, %s341_s14 }
   0x9   :  { %p348_p3 = por %p347_p2, %p346_p1 }
   0xb   :  { %p349_p4 = pnand %p348_p3, %p342_p0 }
   0xd   :  { %352 = shalt.err (!%p349_p4)
}
   0xe   :  { %s400_s16 = smov 256   ;;  %s401_s17 = smov 16  }
   0xf   :  { %23 = dma.hbm_to_vmem [thread:$0]  %s462_s0, 256, %s18_s13, [#allocation5], %s400_s16, %s400_s16, %s401_s17  }
  0x10   :  { %s402_s20 = smov [#allocation7]  }
  0x11   :  { %s30_s21 = sshll.u32 %s402_s20, 4  ;;  %s31_s21 = int_to_ptr.vmem [resolvable:$true] %s30_s21 }
  0x12   :  { %s361_s22 = scalar_lea.vmem %s31_s21, 128  ;;  %p366_p6 = scmp.lt.s32.totalorder %s31_s21, %s31_s21 }
  0x13   :  { %p362_p5 = scmp.ne.s32.totalorder %s31_s21, %s361_s22  ;;  %p367_p7 = scmp.lt.s32.totalorder %s361_s22, %s361_s22 }
  0x15   :  { %p368_p8 = por %p367_p7, %p366_p6 }
  0x17   :  { %p369_p9 = pnand %p368_p8, %p362_p5 }
  0x19   :  { %372 = shalt.err (!%p369_p9)
}
  0x1a   :  { %33 = dma.hbm_to_vmem [thread:$0]  %s463_s1, 128, %s31_s21, [#allocation8]  }
  0x1b   :  { %393 = dma.done.wait [#allocation5], 1024  }
  0x1c   :  { %394 = vsyncadd [#allocation5], 4294966272 }
  0x1d   :  { %395 = dma.done.wait [#allocation8], 128  }
  0x1e   :  { %396 = vsyncadd [#allocation8], 4294967168  ;;  %v58_v0 = vlaneseq  ;;  %vm46_vm0 = vcmask 7168   ;;  %v403_v1 = vmov 1983009808   ;;  %v404_v3 = vmov 0.0  }
  0x1f   :  { %v95_v2 = vunpack.c.l.s4 %v403_v1  ;;  %47 = vst.msk [vmem:[#allocation2] sm:$0xff] %vm46_vm0, %v404_v3  ;;  %v56_v14 = vld [vmem:[#allocation7] sm:$0xff]  ;;  %v49_v33 = vld [vmem:[#allocation4 + $0x8] sm:$0xff]  ;;  %v50_v38 = vld [vmem:[#allocation4 + $0x10] sm:$0xff]  ;;  %s405_s25 = smov 1   ;;  %vm298_vm1 = vcmask 15360  }
  0x20   :  { %v59_v4 = vshrl.u32 %v58_v0, 7  ;;  %v48_v32 = vld [vmem:[#allocation4] sm:$0xff]  ;;  %v54_v40 = vld [vmem:[#allocation4 + $0x30] sm:$0xff]  ;;  %v51_v45 = vld [vmem:[#allocation4 + $0x18] sm:$0xff] }
  0x21   :  { %v96_v5 = vunpack.c.0.s8 %v95_v2  ;;  %v52_v39 = vld [vmem:[#allocation4 + $0x20] sm:$0xff]  ;;  %v53_v46 = vld [vmem:[#allocation4 + $0x28] sm:$0xff]  ;;  %v55_v47 = vld [vmem:[#allocation4 + $0x38] sm:$0xff] }
  0x22   :  { %v60_v6 = vsub.s32 0, %v59_v4  ;;  %v64_v7 = vsub.s32 1, %v59_v4  ;;  %v68_v8 = vsub.s32 2, %v59_v4  ;;  %v72_v9 = vsub.s32 3, %v59_v4 }
  0x23   :  { %v76_v10 = vsub.s32 4, %v59_v4  ;;  %v80_v11 = vsub.s32 5, %v59_v4  ;;  %v84_v12 = vsub.s32 6, %v59_v4  ;;  %v88_v13 = vsub.s32 7, %v59_v4 }
  0x24   :  { %v436_v15 = vsub.s32 %v96_v5, %v59_v4  ;;  %v61_v16 = vrot.slane %v56_v14, %v60_v6  ;;  %v65_v17 = vrot.slane %v56_v14, %v64_v7  ;;  %v69_v18 = vrot.slane %v56_v14, %v68_v8 }
  0x25   :  { %v73_v19 = vrot.slane %v56_v14, %v72_v9  ;;  %v77_v20 = vrot.slane %v56_v14, %v76_v10  ;;  %v81_v21 = vrot.slane %v56_v14, %v80_v11  ;;  %v85_v22 = vrot.slane %v56_v14, %v84_v12 }
  0x26   :  { %v89_v23 = vrot.slane %v56_v14, %v88_v13  ;;  %v90_v24 = vcombine.low %v61_v16, %v65_v17  ;;  %v91_v25 = vcombine.high %v61_v16, %v65_v17 }
  0x27   :  { %v92_v26 = vcombine.low %v69_v18, %v73_v19  ;;  %v93_v27 = vcombine.high %v69_v18, %v73_v19  ;;  %v126_v28 = vcombine.low %v77_v20, %v81_v21  ;;  %v127_v29 = vcombine.high %v77_v20, %v81_v21 }
  0x28   :  { %v128_v30 = vcombine.low %v85_v22, %v89_v23  ;;  %v129_v31 = vcombine.high %v85_v22, %v89_v23  ;;  %v100_v34 = vrot.slane %v90_v24, %v436_v15  ;;  %v107_v35 = vrot.slane %v91_v25, %v436_v15 }
  0x29   :  { %v114_v36 = vrot.slane %v92_v26, %v436_v15  ;;  %v121_v37 = vrot.slane %v93_v27, %v436_v15  ;;  %v136_v41 = vrot.slane %v126_v28, %v436_v15  ;;  %v143_v42 = vrot.slane %v127_v29, %v436_v15 }
  0x2a   :  { %v150_v43 = vrot.slane %v128_v30, %v436_v15  ;;  %v157_v44 = vrot.slane %v129_v31, %v436_v15 }
  0x2b   :  { %v122_v48 = vcombine.low %v100_v34, %v114_v36  ;;  %v123_v49 = vcombine.high %v100_v34, %v114_v36  ;;  %v124_v50 = vcombine.low %v107_v35, %v121_v37  ;;  %v125_v51 = vcombine.high %v107_v35, %v121_v37 }
  0x2c   :  { %v158_v52 = vcombine.low %v136_v41, %v150_v43  ;;  %v159_v53 = vcombine.high %v136_v41, %v150_v43  ;;  %v160_v54 = vcombine.low %v143_v42, %v157_v44  ;;  %v161_v55 = vcombine.high %v143_v42, %v157_v44 }
  0x2d   :  { %v170_v56 = vmul.f32 %v122_v48, %v48_v32  ;;  %v172_v57 = vmul.f32 %v123_v49, %v50_v38  ;;  %v174_v58 = vmul.f32 %v124_v50, %v52_v39  ;;  %v176_v59 = vmul.f32 %v125_v51, %v54_v40  ;;  %v178_v32 = vld [vmem:[#allocation2] sm:$0xff] }
  0x2e   :  { %v171_v60 = vmul.f32 %v158_v52, %v49_v33  ;;  %v173_v61 = vmul.f32 %v159_v53, %v51_v45  ;;  %v175_v62 = vmul.f32 %v160_v54, %v53_v46  ;;  %v177_v63 = vmul.f32 %v161_v55, %v55_v47 }
  0x2f   :  { %v187_v0 = vcombine.low %v170_v56, %v172_v57  ;;  %v188_v1 = vcombine.high %v170_v56, %v172_v57  ;;  %v189_v2 = vcombine.low %v174_v58, %v176_v59  ;;  %v190_v3 = vcombine.high %v174_v58, %v176_v59 }
  0x30   :  { %v223_v4 = vcombine.low %v171_v60, %v173_v61  ;;  %v225_v5 = vcombine.low %v175_v62, %v177_v63  ;;  %v224_v10 = vcombine.high %v171_v60, %v173_v61  ;;  %v226_v11 = vcombine.high %v175_v62, %v177_v63 }
  0x31   :  { %v197_v6 = vrot.slane %v187_v0, %v436_v15  ;;  %v204_v7 = vrot.slane %v188_v1, %v436_v15  ;;  %v211_v8 = vrot.slane %v189_v2, %v436_v15  ;;  %v218_v9 = vrot.slane %v190_v3, %v436_v15 }
  0x32   :  { %v233_v12 = vrot.slane %v223_v4, %v436_v15  ;;  %v247_v17 = vrot.slane %v225_v5, %v436_v15  ;;  %v240_v20 = vrot.slane %v224_v10, %v436_v15  ;;  %v254_v21 = vrot.slane %v226_v11, %v436_v15 }
  0x33   :  { %v219_v13 = vcombine.low %v197_v6, %v211_v8  ;;  %v220_v14 = vcombine.high %v197_v6, %v211_v8  ;;  %v221_v16 = vcombine.low %v204_v7, %v218_v9  ;;  %v222_v18 = vcombine.high %v204_v7, %v218_v9 }
  0x34   :  { %v255_v22 = vcombine.low %v233_v12, %v247_v17  ;;  %v256_v24 = vcombine.high %v233_v12, %v247_v17  ;;  %v257_v26 = vcombine.low %v240_v20, %v254_v21  ;;  %v258_v28 = vcombine.high %v240_v20, %v254_v21 }
  0x35   :  { %v267_v19 = vadd.f32 %v220_v14, %v219_v13  ;;  %v284_v15 = vstv %s464_s2 }
  0x37   :  { %v268_v23 = vadd.f32 %v267_v19, %v221_v16 }
  0x39   :  { %v269_v25 = vadd.f32 %v268_v23, %v222_v18 }
  0x3b   :  { %v270_v27 = vadd.f32 %v269_v25, %v255_v22 }
  0x3d   :  { %v271_v29 = vadd.f32 %v270_v27, %v256_v24 }
  0x3f   :  { %v272_v30 = vadd.f32 %v271_v29, %v257_v26 }
  0x41   :  { %v273_v31 = vadd.f32 %v272_v30, %v258_v28 }
  0x43   :  { %274 = vadd.xlane.f32.xlu0 %v273_v31 }
  0xcc   :  { %v275_v33 = vpop.xlane.xlu0 %274 }
  0xcd   :  { %v276_v34 = vadd.f32 %v275_v33, %v178_v32 }
  0xcf   :  { %278 = vst.msk [vmem:[#allocation2] sm:$0xff] %vm46_vm0, %v276_v34 }
  0xd6   :  { %v282_v35 = vld [vmem:[#allocation2] sm:$0xff] }
  0xd7   :  { %v285_v36 = vadd.f32 %v284_v15, %v282_v35 }
  0xd9   :  { %v318_v37 = vmul.f32 -1.442695, %v285_v36 }
  0xdb   :  { %329 = vpow2.f32 %v318_v37 }
  0xe8   :  { %v330_v38 = vpop.eup %329 }
  0xe9   :  { %v289_v39 = vadd.f32 1.0, %v330_v38 }
  0xeb   :  { %331 = vrcp.f32 %v289_v39 }
  0xf8   :  { %v332_v40 = vpop.eup %331 }
  0xf9   :  { %294 = vrot.lane.b32.xlu0 %v332_v40, %s405_s25  ;;  %v292_v41 = vsub.f32 1.0, %v332_v40 }
 0x16b   :  { %v295_v42 = vpop.permute.xlu0 %294 }
 0x16c   :  { %v297_v43 = vsel %vm46_vm0, %v292_v41, %v295_v42 }
 0x16d   :  { %299 = vst.msk [vmem:[#allocation9] sm:$0xff] %vm298_vm1, %v297_v43 }
 0x16e   :  { %304 = vsyncadd [#allocation6], 96  ;;  %s406_s26 = smov [#allocation9]  }
 0x16f   :  { %s305_s27 = sshll.u32 %s406_s26, 4  ;;  %s306_s27 = int_to_ptr.vmem [resolvable:$true] %s305_s27 }
 0x170   :  { %s373_s2 = scalar_lea.vmem %s306_s27, 32  ;;  %s377_s28 = scalar_lea.vmem %s306_s27, 128 }
 0x171   :  { %p374_p10 = scmp.ne.s32.totalorder %s306_s27, %s373_s2  ;;  %p378_p11 = scmp.lt.s32.totalorder %s306_s27, %s306_s27 }
 0x172   :  { %p379_p12 = scmp.lt.s32.totalorder %s377_s28, %s373_s2 }
 0x174   :  { %p380_p13 = por %p379_p12, %p378_p11 }
 0x176   :  { %p381_p0 = pnand %p380_p13, %p374_p10 }
 0x178   :  { %384 = shalt.err (!%p381_p0)
}
 0x179   :  { %s407_s29 = smov 32   ;;  %s408_s30 = smov 2  }
 0x17a   :  { %311 = dma.vmem_to_hbm [thread:$0]  %s306_s27, 32, %s465_s3, [#allocation6], %s407_s29, %s407_s29, %s408_s30  }
 0x17b   :  { %397 = dma.done.wait [#allocation6], 128  }
 0x17c   :  { %398 = vsyncadd [#allocation6], 4294967168 }
 0x17d   :  { %315 = vsyncpa [#allocation5], 1 }
 0x17e   :  { %316 = vsyncpa [#allocation8], 1 }
 0x17f   :  { %317 = vsyncpa [#allocation6], 1 }

</bundles_post_ra>
